<compile_context>
chip_gen: v7x
topology: tpu7x:2x2x1
jax: 0.10.0
libtpu: 0.0.40
codegen_flags: <defaults>
</compile_context>

<pallas_src>
import jax
import jax.numpy as jnp
import numpy as np
from jax.experimental import pallas as pl
from jax.experimental.pallas import tpu as pltpu

_BN_EPS = 1e-5


# ---------------------------------------------------------------------------
# In-kernel math helpers
# ---------------------------------------------------------------------------
def _erf(x):
    # Abramowitz & Stegun 7.1.26 rational approximation (f32-accurate).
    p = 0.3275911
    a1, a2, a3, a4, a5 = (0.254829592, -0.284496736, 1.421413741,
                          -1.453152027, 1.061405429)
    ax = jnp.abs(x)
    t = 1.0 / (1.0 + p * ax)
    poly = ((((a5 * t + a4) * t + a3) * t + a2) * t + a1) * t
    y = 1.0 - poly * jnp.exp(-ax * ax)
    return jnp.where(x >= 0.0, y, -y)


def _gelu(x):
    # Exact (erf-based) GELU, matching torch.nn.GELU() default.
    return 0.5 * x * (1.0 + _erf(x * 0.7071067811865476))


# ---------------------------------------------------------------------------
# Fused Pallas kernel: maxpool-max + conv3/BN/GELU + conv3/BN/GELU
# ---------------------------------------------------------------------------
def _bruce_down_kernel(xe_ref, xo_ref, w1_ref, b1_ref, w2_ref, b2_ref, o_ref):
    Bn, _, Lh = xe_ref.shape

    # ---- MaxPool1d(2): elementwise max of the even/odd phases --------------
    xp = jnp.maximum(xe_ref[...], xo_ref[...])          # (B, Cin, Lh) f32

    # ---- Banded shift matrices (built once, VMEM/vreg resident) ------------
    # Right-multiplying a (C, Lh) tile by s_prev / s_next shifts it by +1 / -1
    # along L with zero fill, i.e. the k=0 / k=2 taps of a 'same'-padded conv.
    # These run on the idle MXU and replace roll + iota-mask VPU/XLU work.
    row = jax.lax.broadcasted_iota(jnp.int32, (Lh, Lh), 0)
    col = jax.lax.broadcasted_iota(jnp.int32, (Lh, Lh), 1)
    s_prev = jnp.where(col - row == 1, 1.0, 0.0).astype(jnp.float32)  # y[:,l]=x[:,l-1]
    s_next = jnp.where(row - col == 1, 1.0, 0.0).astype(jnp.float32)  # y[:,l]=x[:,l+1]

    w1 = w1_ref[...]
    b1 = b1_ref[...]
    w2 = w2_ref[...]
    b2 = b2_ref[...]

    def conv3_bn_gelu(x, w, b):
        # im2col: stack the three taps along channels -> ONE MXU matmul with
        # K = 3*C.  Eval-mode BatchNorm is already folded into (w, b).
        xk = jnp.concatenate(
            [jnp.dot(x, s_prev, preferred_element_type=jnp.float32),
             x,
             jnp.dot(x, s_next, preferred_element_type=jnp.float32)],
            axis=0)                                     # (3*C, Lh)
        y = jnp.dot(w, xk, preferred_element_type=jnp.float32) + b
        return _gelu(y)

    # Static unroll over the (tiny) batch; everything stays VMEM-resident.
    for bi in range(Bn):
        h = conv3_bn_gelu(xp[bi], w1, b1)
        h = conv3_bn_gelu(h, w2, b2)
        # nn.Dropout(0.1) is the identity in eval mode.
        o_ref[bi] = h.astype(o_ref.dtype)


# ---------------------------------------------------------------------------
# pallas_call wrapper
# ---------------------------------------------------------------------------
def bruce_down_forward(x, params):
    """BruceDown forward (eval mode): x (B, Cin, L) -> (B, Cout, L//2)."""
    B, Cin, L = x.shape
    assert L % 2 == 0, "MaxPool1d(2) path assumes an even length"
    Lh = L // 2
    Cout = params["w1k"].shape[0]

    # Even/odd phase split of the length axis (one XLA strided slice); the
    # max itself and everything downstream are fused into the Pallas kernel.
    xe = x[:, :, 0::2]
    xo = x[:, :, 1::2]

    vmem = pl.BlockSpec(memory_space=pltpu.MemorySpace.VMEM)
    return pl.pallas_call(
        _bruce_down_kernel,
        out_shape=jax.ShapeDtypeStruct((B, Cout, Lh), jnp.float32),
        in_specs=[vmem] * 6,
        out_specs=vmem,
    )(xe, xo, params["w1k"], params["b1k"], params["w2k"], params["b2k"])


# ---------------------------------------------------------------------------
# Parameter construction (deterministic, synthetic — no checkpoint loading)
# ---------------------------------------------------------------------------
def _fold_bn(w, b, gamma, beta, mean, var):
    # Eval-mode BatchNorm1d folded into the preceding Conv1d.
    s = gamma / jnp.sqrt(var + _BN_EPS)                 # (Cout,)
    return w * s[:, None, None], s * (b - mean) + beta


def _to_im2col(w):
    # torch Conv1d weight (Cout, Cin, K) -> (Cout, K*Cin); row index kk*Cin + i
    # matches the in-kernel tap stacking [x_{l-1}; x_l; x_{l+1}].
    o, i, k = w.shape
    return jnp.transpose(w, (0, 2, 1)).reshape(o, k * i)


def init_bruce_down_params(key, cin, cout, k=3):
    k1, k2, k3, k4 = jax.random.split(key, 4)
    # torch Conv1d layout: weight (Cout, Cin, K), bias (Cout,)
    w1 = jax.random.normal(k1, (cout, cin, k), jnp.float32) * 0.1
    b1 = jax.random.normal(k2, (cout,), jnp.float32) * 0.1
    w2 = jax.random.normal(k3, (cout, cout, k), jnp.float32) * 0.1
    b2 = jax.random.normal(k4, (cout,), jnp.float32) * 0.1
    # BatchNorm1d __init__/eval state: gamma=1, beta=0, running_mean=0, running_var=1
    gamma = jnp.ones((cout,), jnp.float32)
    beta = jnp.zeros((cout,), jnp.float32)
    mean = jnp.zeros((cout,), jnp.float32)
    var = jnp.ones((cout,), jnp.float32)
    w1f, b1f = _fold_bn(w1, b1, gamma, beta, mean, var)
    w2f, b2f = _fold_bn(w2, b2, gamma, beta, mean, var)
    return {
        # raw torch-layout params (used only by the pure-JAX reference check)
        "w1": w1, "b1": b1, "w2": w2, "b2": b2,
        # kernel-layout params: BN folded + im2col reshape
        "w1k": _to_im2col(w1f), "b1k": b1f.reshape(cout, 1),
        "w2k": _to_im2col(w2f), "b2k": b2f.reshape(cout, 1),
    }


# ---------------------------------------------------------------------------
# Pure-JAX (unfused) reference of the PyTorch module, for a structural check
# ---------------------------------------------------------------------------
def bruce_down_reference(x, params):
    B, Cin, L = x.shape
    xp = jnp.max(x.reshape(B, Cin, L // 2, 2), axis=-1)        # MaxPool1d(2)
    bn_scale = 1.0 / jnp.sqrt(1.0 + _BN_EPS)                   # eval BN, init stats

    def block(h, w, b):
        hp = jnp.pad(h, ((0, 0), (0, 0), (1, 1)))
        y = (jnp.einsum("bil,oi->bol", hp[:, :, 0:-2], w[:, :, 0])
             + jnp.einsum("bil,oi->bol", hp[:, :, 1:-1], w[:, :, 1])
             + jnp.einsum("bil,oi->bol", hp[:, :, 2:], w[:, :, 2]))
        y = (y + b[None, :, None]) * bn_scale
        return jax.nn.gelu(y, approximate=False)

    h = block(xp, params["w1"], params["b1"])
    h = block(h, params["w2"], params["b2"])
    return h                                                    # Dropout = id (eval)


# ---------------------------------------------------------------------------
if __name__ == "__main__":
    # Small shapes consistent with BruceDown(in_channel=8, out_channel=16, kernel_size=3)
    B, C_IN, C_OUT, L = 2, 8, 16, 256

    key = jax.random.PRNGKey(0)
    kp, kx = jax.random.split(key)
    params = init_bruce_down_params(kp, C_IN, C_OUT)
    x = jax.random.normal(kx, (B, C_IN, L), dtype=jnp.float32)

    fwd = jax.jit(bruce_down_forward)
    y = jax.block_until_ready(fwd(x, params))

    assert y.shape == (B, C_OUT, L // 2), y.shape
    assert bool(jnp.all(jnp.isfinite(y)))

    # Structural correctness check against the unfused pure-JAX reference
    # (loose tolerance: MXU f32 matmul precision can differ from XLA einsum/erf).
    y_ref = jax.block_until_ready(bruce_down_reference(x, params))
    np.testing.assert_allclose(np.asarray(y), np.asarray(y_ref),
                               atol=2e-2, rtol=5e-2)

    print("KERNEL_OK")
</pallas_src>

<mosaic_0001>
module attributes {stable_mosaic.version = 11 : i64} {
  func.func @_bruce_down_kernel(%arg0: memref<2x8x128xf32, #tpu.memory_space<vmem>>, %arg1: memref<2x8x128xf32, #tpu.memory_space<vmem>>, %arg2: memref<16x24xf32, #tpu.memory_space<vmem>>, %arg3: memref<16x1xf32, #tpu.memory_space<vmem>>, %arg4: memref<16x48xf32, #tpu.memory_space<vmem>>, %arg5: memref<16x1xf32, #tpu.memory_space<vmem>>, %arg6: memref<2x16x128xf32, #tpu.memory_space<vmem>>) attributes {dimension_semantics = [], scalar_prefetch = 0 : i64, scratch_operands = 0 : i64, tpu.core_type = #tpu.core_type<tc>} {
    %c0 = arith.constant 0 : index
    %c0_0 = arith.constant 0 : index
    %c0_1 = arith.constant 0 : index
    %0 = vector.load %arg0[%c0, %c0_0, %c0_1] : memref<2x8x128xf32, #tpu.memory_space<vmem>>, vector<2x8x128xf32>
    %c0_2 = arith.constant 0 : index
    %c0_3 = arith.constant 0 : index
    %c0_4 = arith.constant 0 : index
    %1 = vector.load %arg1[%c0_2, %c0_3, %c0_4] : memref<2x8x128xf32, #tpu.memory_space<vmem>>, vector<2x8x128xf32>
    %2 = arith.maximumf %0, %1 : vector<2x8x128xf32>
    %3 = tpu.iota {dimensions = array<i32: 0>} : vector<128x128xi32>
    %4 = tpu.iota {dimensions = array<i32: 1>} : vector<128x128xi32>
    %5 = arith.subi %4, %3 : vector<128x128xi32>
    %c1_i32 = arith.constant 1 : i32
    %6 = vector.broadcast %c1_i32 : i32 to vector<128x128xi32>
    %7 = arith.cmpi eq, %5, %6 : vector<128x128xi32>
    %cst = arith.constant 1.000000e+00 : f32
    %cst_5 = arith.constant 0.000000e+00 : f32
    %8 = vector.broadcast %cst : f32 to vector<128x128xf32>
    %9 = vector.broadcast %cst_5 : f32 to vector<128x128xf32>
    %10 = arith.select %7, %8, %9 : vector<128x128xi1>, vector<128x128xf32>
    %11 = arith.subi %3, %4 : vector<128x128xi32>
    %c1_i32_6 = arith.constant 1 : i32
    %12 = vector.broadcast %c1_i32_6 : i32 to vector<128x128xi32>
    %13 = arith.cmpi eq, %11, %12 : vector<128x128xi32>
    %cst_7 = arith.constant 1.000000e+00 : f32
    %cst_8 = arith.constant 0.000000e+00 : f32
    %14 = vector.broadcast %cst_7 : f32 to vector<128x128xf32>
    %15 = vector.broadcast %cst_8 : f32 to vector<128x128xf32>
    %16 = arith.select %13, %14, %15 : vector<128x128xi1>, vector<128x128xf32>
    %c0_9 = arith.constant 0 : index
    %c0_10 = arith.constant 0 : index
    %17 = vector.load %arg2[%c0_9, %c0_10] : memref<16x24xf32, #tpu.memory_space<vmem>>, vector<16x24xf32>
    %c0_11 = arith.constant 0 : index
    %c0_12 = arith.constant 0 : index
    %18 = vector.load %arg3[%c0_11, %c0_12] : memref<16x1xf32, #tpu.memory_space<vmem>>, vector<16x1xf32>
    %c0_13 = arith.constant 0 : index
    %c0_14 = arith.constant 0 : index
    %19 = vector.load %arg4[%c0_13, %c0_14] : memref<16x48xf32, #tpu.memory_space<vmem>>, vector<16x48xf32>
    %c0_15 = arith.constant 0 : index
    %c0_16 = arith.constant 0 : index
    %20 = vector.load %arg5[%c0_15, %c0_16] : memref<16x1xf32, #tpu.memory_space<vmem>>, vector<16x1xf32>
    %21 = vector.extract_strided_slice %2 {offsets = [0, 0, 0], sizes = [1, 8, 128], strides = [1, 1, 1]} : vector<2x8x128xf32> to vector<1x8x128xf32>
    %22 = vector.shape_cast %21 : vector<1x8x128xf32> to vector<8x128xf32>
    %cst_17 = arith.constant dense<0.000000e+00> : vector<8x128xf32>
    %23 = tpu.matmul %22, %10, %cst_17 {dimension_numbers = #tpu.dot_dimension_numbers<[1], [0], [0], [1], [0, 0, 1, 1], [], []>} : vector<8x128xf32>, vector<128x128xf32>, vector<8x128xf32> -> vector<8x128xf32>
    %cst_18 = arith.constant dense<0.000000e+00> : vector<8x128xf32>
    %24 = tpu.matmul %22, %16, %cst_18 {dimension_numbers = #tpu.dot_dimension_numbers<[1], [0], [0], [1], [0, 0, 1, 1], [], []>} : vector<8x128xf32>, vector<128x128xf32>, vector<8x128xf32> -> vector<8x128xf32>
    %25 = tpu.concatenate %23, %22, %24 in 0 : vector<8x128xf32>, vector<8x128xf32>, vector<8x128xf32> -> vector<24x128xf32>
    %cst_19 = arith.constant dense<0.000000e+00> : vector<16x128xf32>
    %26 = tpu.matmul %17, %25, %cst_19 {dimension_numbers = #tpu.dot_dimension_numbers<[1], [0], [0], [1], [0, 0, 1, 1], [], []>} : vector<16x24xf32>, vector<24x128xf32>, vector<16x128xf32> -> vector<16x128xf32>
    %27 = vector.broadcast %18 : vector<16x1xf32> to vector<16x128xf32>
    %28 = arith.addf %26, %27 : vector<16x128xf32>
    %cst_20 = arith.constant 5.000000e-01 : f32
    %29 = vector.broadcast %cst_20 : f32 to vector<16x128xf32>
    %30 = arith.mulf %29, %28 : vector<16x128xf32>
    %cst_21 = arith.constant 0.707106769 : f32
    %31 = vector.broadcast %cst_21 : f32 to vector<16x128xf32>
    %32 = arith.mulf %28, %31 : vector<16x128xf32>
    %33 = math.absf %32 : vector<16x128xf32>
    %cst_22 = arith.constant 0.327591091 : f32
    %34 = vector.broadcast %cst_22 : f32 to vector<16x128xf32>
    %35 = arith.mulf %34, %33 : vector<16x128xf32>
    %cst_23 = arith.constant 1.000000e+00 : f32
    %36 = vector.broadcast %cst_23 : f32 to vector<16x128xf32>
    %37 = arith.addf %36, %35 : vector<16x128xf32>
    %cst_24 = arith.constant 1.000000e+00 : f32
    %38 = vector.broadcast %cst_24 : f32 to vector<16x128xf32>
    %39 = arith.divf %38, %37 : vector<16x128xf32>
    %cst_25 = arith.constant 1.06140542 : f32
    %40 = vector.broadcast %cst_25 : f32 to vector<16x128xf32>
    %41 = arith.mulf %40, %39 : vector<16x128xf32>
    %cst_26 = arith.constant -1.45315206 : f32
    %42 = vector.broadcast %cst_26 : f32 to vector<16x128xf32>
    %43 = arith.addf %41, %42 : vector<16x128xf32>
    %44 = arith.mulf %43, %39 : vector<16x128xf32>
    %cst_27 = arith.constant 1.42141378 : f32
    %45 = vector.broadcast %cst_27 : f32 to vector<16x128xf32>
    %46 = arith.addf %44, %45 : vector<16x128xf32>
    %47 = arith.mulf %46, %39 : vector<16x128xf32>
    %cst_28 = arith.constant -0.284496725 : f32
    %48 = vector.broadcast %cst_28 : f32 to vector<16x128xf32>
    %49 = arith.addf %47, %48 : vector<16x128xf32>
    %50 = arith.mulf %49, %39 : vector<16x128xf32>
    %cst_29 = arith.constant 0.254829586 : f32
    %51 = vector.broadcast %cst_29 : f32 to vector<16x128xf32>
    %52 = arith.addf %50, %51 : vector<16x128xf32>
    %53 = arith.mulf %52, %39 : vector<16x128xf32>
    %cst_30 = arith.constant 0.000000e+00 : f32
    %54 = vector.broadcast %cst_30 : f32 to vector<16x128xf32>
    %55 = arith.subf %54, %33 : vector<16x128xf32>
    %56 = arith.mulf %55, %33 : vector<16x128xf32>
    %57 = math.exp %56 : vector<16x128xf32>
    %58 = arith.mulf %53, %57 : vector<16x128xf32>
    %cst_31 = arith.constant 1.000000e+00 : f32
    %59 = vector.broadcast %cst_31 : f32 to vector<16x128xf32>
    %60 = arith.subf %59, %58 : vector<16x128xf32>
    %cst_32 = arith.constant 0.000000e+00 : f32
    %61 = vector.broadcast %cst_32 : f32 to vector<16x128xf32>
    %62 = arith.cmpf oge, %32, %61 : vector<16x128xf32>
    %cst_33 = arith.constant 0.000000e+00 : f32
    %63 = vector.broadcast %cst_33 : f32 to vector<16x128xf32>
    %64 = arith.subf %63, %60 : vector<16x128xf32>
    %65 = arith.select %62, %60, %64 : vector<16x128xi1>, vector<16x128xf32>
    %cst_34 = arith.constant 1.000000e+00 : f32
    %66 = vector.broadcast %cst_34 : f32 to vector<16x128xf32>
    %67 = arith.addf %66, %65 : vector<16x128xf32>
    %68 = arith.mulf %30, %67 : vector<16x128xf32>
    %cst_35 = arith.constant dense<0.000000e+00> : vector<16x128xf32>
    %69 = tpu.matmul %68, %10, %cst_35 {dimension_numbers = #tpu.dot_dimension_numbers<[1], [0], [0], [1], [0, 0, 1, 1], [], []>} : vector<16x128xf32>, vector<128x128xf32>, vector<16x128xf32> -> vector<16x128xf32>
    %cst_36 = arith.constant dense<0.000000e+00> : vector<16x128xf32>
    %70 = tpu.matmul %68, %16, %cst_36 {dimension_numbers = #tpu.dot_dimension_numbers<[1], [0], [0], [1], [0, 0, 1, 1], [], []>} : vector<16x128xf32>, vector<128x128xf32>, vector<16x128xf32> -> vector<16x128xf32>
    %71 = tpu.concatenate %69, %68, %70 in 0 : vector<16x128xf32>, vector<16x128xf32>, vector<16x128xf32> -> vector<48x128xf32>
    %cst_37 = arith.constant dense<0.000000e+00> : vector<16x128xf32>
    %72 = tpu.matmul %19, %71, %cst_37 {dimension_numbers = #tpu.dot_dimension_numbers<[1], [0], [0], [1], [0, 0, 1, 1], [], []>} : vector<16x48xf32>, vector<48x128xf32>, vector<16x128xf32> -> vector<16x128xf32>
    %73 = vector.broadcast %20 : vector<16x1xf32> to vector<16x128xf32>
    %74 = arith.addf %72, %73 : vector<16x128xf32>
    %cst_38 = arith.constant 5.000000e-01 : f32
    %75 = vector.broadcast %cst_38 : f32 to vector<16x128xf32>
    %76 = arith.mulf %75, %74 : vector<16x128xf32>
    %cst_39 = arith.constant 0.707106769 : f32
    %77 = vector.broadcast %cst_39 : f32 to vector<16x128xf32>
    %78 = arith.mulf %74, %77 : vector<16x128xf32>
    %79 = math.absf %78 : vector<16x128xf32>
    %cst_40 = arith.constant 0.327591091 : f32
    %80 = vector.broadcast %cst_40 : f32 to vector<16x128xf32>
    %81 = arith.mulf %80, %79 : vector<16x128xf32>
    %cst_41 = arith.constant 1.000000e+00 : f32
    %82 = vector.broadcast %cst_41 : f32 to vector<16x128xf32>
    %83 = arith.addf %82, %81 : vector<16x128xf32>
    %cst_42 = arith.constant 1.000000e+00 : f32
    %84 = vector.broadcast %cst_42 : f32 to vector<16x128xf32>
    %85 = arith.divf %84, %83 : vector<16x128xf32>
    %cst_43 = arith.constant 1.06140542 : f32
    %86 = vector.broadcast %cst_43 : f32 to vector<16x128xf32>
    %87 = arith.mulf %86, %85 : vector<16x128xf32>
    %cst_44 = arith.constant -1.45315206 : f32
    %88 = vector.broadcast %cst_44 : f32 to vector<16x128xf32>
    %89 = arith.addf %87, %88 : vector<16x128xf32>
    %90 = arith.mulf %89, %85 : vector<16x128xf32>
    %cst_45 = arith.constant 1.42141378 : f32
    %91 = vector.broadcast %cst_45 : f32 to vector<16x128xf32>
    %92 = arith.addf %90, %91 : vector<16x128xf32>
    %93 = arith.mulf %92, %85 : vector<16x128xf32>
    %cst_46 = arith.constant -0.284496725 : f32
    %94 = vector.broadcast %cst_46 : f32 to vector<16x128xf32>
    %95 = arith.addf %93, %94 : vector<16x128xf32>
    %96 = arith.mulf %95, %85 : vector<16x128xf32>
    %cst_47 = arith.constant 0.254829586 : f32
    %97 = vector.broadcast %cst_47 : f32 to vector<16x128xf32>
    %98 = arith.addf %96, %97 : vector<16x128xf32>
    %99 = arith.mulf %98, %85 : vector<16x128xf32>
    %cst_48 = arith.constant 0.000000e+00 : f32
    %100 = vector.broadcast %cst_48 : f32 to vector<16x128xf32>
    %101 = arith.subf %100, %79 : vector<16x128xf32>
    %102 = arith.mulf %101, %79 : vector<16x128xf32>
    %103 = math.exp %102 : vector<16x128xf32>
    %104 = arith.mulf %99, %103 : vector<16x128xf32>
    %cst_49 = arith.constant 1.000000e+00 : f32
    %105 = vector.broadcast %cst_49 : f32 to vector<16x128xf32>
    %106 = arith.subf %105, %104 : vector<16x128xf32>
    %cst_50 = arith.constant 0.000000e+00 : f32
    %107 = vector.broadcast %cst_50 : f32 to vector<16x128xf32>
    %108 = arith.cmpf oge, %78, %107 : vector<16x128xf32>
    %cst_51 = arith.constant 0.000000e+00 : f32
    %109 = vector.broadcast %cst_51 : f32 to vector<16x128xf32>
    %110 = arith.subf %109, %106 : vector<16x128xf32>
    %111 = arith.select %108, %106, %110 : vector<16x128xi1>, vector<16x128xf32>
    %cst_52 = arith.constant 1.000000e+00 : f32
    %112 = vector.broadcast %cst_52 : f32 to vector<16x128xf32>
    %113 = arith.addf %112, %111 : vector<16x128xf32>
    %114 = arith.mulf %76, %113 : vector<16x128xf32>
    %c0_53 = arith.constant 0 : index
    %c0_54 = arith.constant 0 : index
    %c0_55 = arith.constant 0 : index
    %115 = vector.load %arg6[%c0_53, %c0_54, %c0_55] : memref<2x16x128xf32, #tpu.memory_space<vmem>>, vector<1x16x128xf32>
    %116 = vector.shape_cast %115 : vector<1x16x128xf32> to vector<16x128xf32>
    %117 = vector.shape_cast %114 : vector<16x128xf32> to vector<1x16x128xf32>
    tpu.vector_store %arg6[%c0_53, %c0_54, %c0_55], %117 {strides = array<i32>} : memref<2x16x128xf32, #tpu.memory_space<vmem>>, vector<1x16x128xf32>,
    %118 = vector.extract_strided_slice %2 {offsets = [1, 0, 0], sizes = [1, 8, 128], strides = [1, 1, 1]} : vector<2x8x128xf32> to vector<1x8x128xf32>
    %119 = vector.shape_cast %118 : vector<1x8x128xf32> to vector<8x128xf32>
    %cst_56 = arith.constant dense<0.000000e+00> : vector<8x128xf32>
    %120 = tpu.matmul %119, %10, %cst_56 {dimension_numbers = #tpu.dot_dimension_numbers<[1], [0], [0], [1], [0, 0, 1, 1], [], []>} : vector<8x128xf32>, vector<128x128xf32>, vector<8x128xf32> -> vector<8x128xf32>
    %cst_57 = arith.constant dense<0.000000e+00> : vector<8x128xf32>
    %121 = tpu.matmul %119, %16, %cst_57 {dimension_numbers = #tpu.dot_dimension_numbers<[1], [0], [0], [1], [0, 0, 1, 1], [], []>} : vector<8x128xf32>, vector<128x128xf32>, vector<8x128xf32> -> vector<8x128xf32>
    %122 = tpu.concatenate %120, %119, %121 in 0 : vector<8x128xf32>, vector<8x128xf32>, vector<8x128xf32> -> vector<24x128xf32>
    %cst_58 = arith.constant dense<0.000000e+00> : vector<16x128xf32>
    %123 = tpu.matmul %17, %122, %cst_58 {dimension_numbers = #tpu.dot_dimension_numbers<[1], [0], [0], [1], [0, 0, 1, 1], [], []>} : vector<16x24xf32>, vector<24x128xf32>, vector<16x128xf32> -> vector<16x128xf32>
    %124 = vector.broadcast %18 : vector<16x1xf32> to vector<16x128xf32>
    %125 = arith.addf %123, %124 : vector<16x128xf32>
    %cst_59 = arith.constant 5.000000e-01 : f32
    %126 = vector.broadcast %cst_59 : f32 to vector<16x128xf32>
    %127 = arith.mulf %126, %125 : vector<16x128xf32>
    %cst_60 = arith.constant 0.707106769 : f32
    %128 = vector.broadcast %cst_60 : f32 to vector<16x128xf32>
    %129 = arith.mulf %125, %128 : vector<16x128xf32>
    %130 = math.absf %129 : vector<16x128xf32>
    %cst_61 = arith.constant 0.327591091 : f32
    %131 = vector.broadcast %cst_61 : f32 to vector<16x128xf32>
    %132 = arith.mulf %131, %130 : vector<16x128xf32>
    %cst_62 = arith.constant 1.000000e+00 : f32
    %133 = vector.broadcast %cst_62 : f32 to vector<16x128xf32>
    %134 = arith.addf %133, %132 : vector<16x128xf32>
    %cst_63 = arith.constant 1.000000e+00 : f32
    %135 = vector.broadcast %cst_63 : f32 to vector<16x128xf32>
    %136 = arith.divf %135, %134 : vector<16x128xf32>
    %cst_64 = arith.constant 1.06140542 : f32
    %137 = vector.broadcast %cst_64 : f32 to vector<16x128xf32>
    %138 = arith.mulf %137, %136 : vector<16x128xf32>
    %cst_65 = arith.constant -1.45315206 : f32
    %139 = vector.broadcast %cst_65 : f32 to vector<16x128xf32>
    %140 = arith.addf %138, %139 : vector<16x128xf32>
    %141 = arith.mulf %140, %136 : vector<16x128xf32>
    %cst_66 = arith.constant 1.42141378 : f32
    %142 = vector.broadcast %cst_66 : f32 to vector<16x128xf32>
    %143 = arith.addf %141, %142 : vector<16x128xf32>
    %144 = arith.mulf %143, %136 : vector<16x128xf32>
    %cst_67 = arith.constant -0.284496725 : f32
    %145 = vector.broadcast %cst_67 : f32 to vector<16x128xf32>
    %146 = arith.addf %144, %145 : vector<16x128xf32>
    %147 = arith.mulf %146, %136 : vector<16x128xf32>
    %cst_68 = arith.constant 0.254829586 : f32
    %148 = vector.broadcast %cst_68 : f32 to vector<16x128xf32>
    %149 = arith.addf %147, %148 : vector<16x128xf32>
    %150 = arith.mulf %149, %136 : vector<16x128xf32>
    %cst_69 = arith.constant 0.000000e+00 : f32
    %151 = vector.broadcast %cst_69 : f32 to vector<16x128xf32>
    %152 = arith.subf %151, %130 : vector<16x128xf32>
    %153 = arith.mulf %152, %130 : vector<16x128xf32>
    %154 = math.exp %153 : vector<16x128xf32>
    %155 = arith.mulf %150, %154 : vector<16x128xf32>
    %cst_70 = arith.constant 1.000000e+00 : f32
    %156 = vector.broadcast %cst_70 : f32 to vector<16x128xf32>
    %157 = arith.subf %156, %155 : vector<16x128xf32>
    %cst_71 = arith.constant 0.000000e+00 : f32
    %158 = vector.broadcast %cst_71 : f32 to vector<16x128xf32>
    %159 = arith.cmpf oge, %129, %158 : vector<16x128xf32>
    %cst_72 = arith.constant 0.000000e+00 : f32
    %160 = vector.broadcast %cst_72 : f32 to vector<16x128xf32>
    %161 = arith.subf %160, %157 : vector<16x128xf32>
    %162 = arith.select %159, %157, %161 : vector<16x128xi1>, vector<16x128xf32>
    %cst_73 = arith.constant 1.000000e+00 : f32
    %163 = vector.broadcast %cst_73 : f32 to vector<16x128xf32>
    %164 = arith.addf %163, %162 : vector<16x128xf32>
    %165 = arith.mulf %127, %164 : vector<16x128xf32>
    %cst_74 = arith.constant dense<0.000000e+00> : vector<16x128xf32>
    %166 = tpu.matmul %165, %10, %cst_74 {dimension_numbers = #tpu.dot_dimension_numbers<[1], [0], [0], [1], [0, 0, 1, 1], [], []>} : vector<16x128xf32>, vector<128x128xf32>, vector<16x128xf32> -> vector<16x128xf32>
    %cst_75 = arith.constant dense<0.000000e+00> : vector<16x128xf32>
    %167 = tpu.matmul %165, %16, %cst_75 {dimension_numbers = #tpu.dot_dimension_numbers<[1], [0], [0], [1], [0, 0, 1, 1], [], []>} : vector<16x128xf32>, vector<128x128xf32>, vector<16x128xf32> -> vector<16x128xf32>
    %168 = tpu.concatenate %166, %165, %167 in 0 : vector<16x128xf32>, vector<16x128xf32>, vector<16x128xf32> -> vector<48x128xf32>
    %cst_76 = arith.constant dense<0.000000e+00> : vector<16x128xf32>
    %169 = tpu.matmul %19, %168, %cst_76 {dimension_numbers = #tpu.dot_dimension_numbers<[1], [0], [0], [1], [0, 0, 1, 1], [], []>} : vector<16x48xf32>, vector<48x128xf32>, vector<16x128xf32> -> vector<16x128xf32>
    %170 = vector.broadcast %20 : vector<16x1xf32> to vector<16x128xf32>
    %171 = arith.addf %169, %170 : vector<16x128xf32>
    %cst_77 = arith.constant 5.000000e-01 : f32
    %172 = vector.broadcast %cst_77 : f32 to vector<16x128xf32>
    %173 = arith.mulf %172, %171 : vector<16x128xf32>
    %cst_78 = arith.constant 0.707106769 : f32
    %174 = vector.broadcast %cst_78 : f32 to vector<16x128xf32>
    %175 = arith.mulf %171, %174 : vector<16x128xf32>
    %176 = math.absf %175 : vector<16x128xf32>
    %cst_79 = arith.constant 0.327591091 : f32
    %177 = vector.broadcast %cst_79 : f32 to vector<16x128xf32>
    %178 = arith.mulf %177, %176 : vector<16x128xf32>
    %cst_80 = arith.constant 1.000000e+00 : f32
    %179 = vector.broadcast %cst_80 : f32 to vector<16x128xf32>
    %180 = arith.addf %179, %178 : vector<16x128xf32>
    %cst_81 = arith.constant 1.000000e+00 : f32
    %181 = vector.broadcast %cst_81 : f32 to vector<16x128xf32>
    %182 = arith.divf %181, %180 : vector<16x128xf32>
    %cst_82 = arith.constant 1.06140542 : f32
    %183 = vector.broadcast %cst_82 : f32 to vector<16x128xf32>
    %184 = arith.mulf %183, %182 : vector<16x128xf32>
    %cst_83 = arith.constant -1.45315206 : f32
    %185 = vector.broadcast %cst_83 : f32 to vector<16x128xf32>
    %186 = arith.addf %184, %185 : vector<16x128xf32>
    %187 = arith.mulf %186, %182 : vector<16x128xf32>
    %cst_84 = arith.constant 1.42141378 : f32
    %188 = vector.broadcast %cst_84 : f32 to vector<16x128xf32>
    %189 = arith.addf %187, %188 : vector<16x128xf32>
    %190 = arith.mulf %189, %182 : vector<16x128xf32>
    %cst_85 = arith.constant -0.284496725 : f32
    %191 = vector.broadcast %cst_85 : f32 to vector<16x128xf32>
    %192 = arith.addf %190, %191 : vector<16x128xf32>
    %193 = arith.mulf %192, %182 : vector<16x128xf32>
    %cst_86 = arith.constant 0.254829586 : f32
    %194 = vector.broadcast %cst_86 : f32 to vector<16x128xf32>
    %195 = arith.addf %193, %194 : vector<16x128xf32>
    %196 = arith.mulf %195, %182 : vector<16x128xf32>
    %cst_87 = arith.constant 0.000000e+00 : f32
    %197 = vector.broadcast %cst_87 : f32 to vector<16x128xf32>
    %198 = arith.subf %197, %176 : vector<16x128xf32>
    %199 = arith.mulf %198, %176 : vector<16x128xf32>
    %200 = math.exp %199 : vector<16x128xf32>
    %201 = arith.mulf %196, %200 : vector<16x128xf32>
    %cst_88 = arith.constant 1.000000e+00 : f32
    %202 = vector.broadcast %cst_88 : f32 to vector<16x128xf32>
    %203 = arith.subf %202, %201 : vector<16x128xf32>
    %cst_89 = arith.constant 0.000000e+00 : f32
    %204 = vector.broadcast %cst_89 : f32 to vector<16x128xf32>
    %205 = arith.cmpf oge, %175, %204 : vector<16x128xf32>
    %cst_90 = arith.constant 0.000000e+00 : f32
    %206 = vector.broadcast %cst_90 : f32 to vector<16x128xf32>
    %207 = arith.subf %206, %203 : vector<16x128xf32>
    %208 = arith.select %205, %203, %207 : vector<16x128xi1>, vector<16x128xf32>
    %cst_91 = arith.constant 1.000000e+00 : f32
    %209 = vector.broadcast %cst_91 : f32 to vector<16x128xf32>
    %210 = arith.addf %209, %208 : vector<16x128xf32>
    %211 = arith.mulf %173, %210 : vector<16x128xf32>
    %c1 = arith.constant 1 : index
    %c0_92 = arith.constant 0 : index
    %c0_93 = arith.constant 0 : index
    %212 = vector.load %arg6[%c1, %c0_92, %c0_93] : memref<2x16x128xf32, #tpu.memory_space<vmem>>, vector<1x16x128xf32>
    %213 = vector.shape_cast %212 : vector<1x16x128xf32> to vector<16x128xf32>
    %214 = vector.shape_cast %211 : vector<16x128xf32> to vector<1x16x128xf32>
    tpu.vector_store %arg6[%c1, %c0_92, %c0_93], %214 {strides = array<i32>} : memref<2x16x128xf32, #tpu.memory_space<vmem>>, vector<1x16x128xf32>,
    return
  }
}

</mosaic_0001>

<bundles_post_ra>
// kernel: bruce_down_forward.1
= control target key start
LH: loop header
LB: loop body
LE: loop exit
PB: predicated region body
PF: predicated region fallthrough
CT: control target
= control target key end

     0   :  { %v30_v0 = vlaneseq  ;;  %v2256_v1 = vmov 0.0|0.0   ;;  %s2874_s0 = inlined_call_operand.vmem [shape: f32[2,8,128], index: 0, kind: input, shape index: {}]   ;;  %s2875_s1 = inlined_call_operand.vmem [shape: f32[2,8,128], index: 1, kind: input, shape index: {}]   ;;  %s2876_s2 = inlined_call_operand.vmem [shape: f32[16,24], index: 2, kind: input, shape index: {}]   ;;  %s2877_s3 = inlined_call_operand.vmem [shape: f32[16,1], index: 3, kind: input, shape index: {}]   ;;  %s2878_s4 = inlined_call_operand.vmem [shape: f32[16,48], index: 4, kind: input, shape index: {}]   ;;  %s2879_s5 = inlined_call_operand.vmem [shape: f32[16,1], index: 5, kind: input, shape index: {}]   ;;  %s2880_s6 = inlined_call_operand.hbm [shape: f32[2,16,128], index: 6, kind: output, shape index: {}]  }
   0x1   :  { %1934 = vmatprep.subr.bf16.mxu0 %v2256_v1  ;;  %1958 = vmatprep.subr.bf16.mxu1 %v2256_v1 }
   0x2   :  { %11 = vsyncpa [#allocation3], 0  ;;  %v2301_v2 = vshrl.u32 %v30_v0, 7  ;;  %v2303_v3 = vand.u32 127, %v30_v0  ;;  %vm2881_vm0 = vmmov 0   ;;  %v2258_v4 = vmov 0.0  }
   0x3   :  { %1638 = vmatprep.mubr.msk.f32.mxu0 %vm2881_vm0, %v2258_v4  ;;  %1673 = vmatprep.mubr.msk.f32.mxu1 %vm2881_vm0, %v2258_v4  ;;  %v2259_v23 = vmov 1.0|1.0   ;;  %v2915_v39 = vmov 0  ;;  %v2919_v47 = vmov 0  ;;  %v2923_v55 = vmov 0 }
   0x4   :  { %v32_v5 = vadd.s32 8, %v2301_v2  ;;  %v49_v6 = vsub.s32 %v2303_v3, %v2301_v2  ;;  %v33_v7 = vadd.s32 16, %v2301_v2  ;;  %v34_v8 = vadd.s32 24, %v2301_v2 }
   0x5   :  { %v97_v9 = vsub.s32 %v2301_v2, %v2303_v3  ;;  %v35_v10 = vadd.s32 32, %v2301_v2  ;;  %v36_v11 = vadd.s32 40, %v2301_v2  ;;  %v37_v12 = vadd.s32 48, %v2301_v2 }
   0x6   :  { %v50_v13 = vsub.s32 %v2303_v3, %v32_v5  ;;  %vm65_vm1 = vcmp.eq.s32.totalorder %v49_v6, 1  ;;  %v51_v14 = vsub.s32 %v2303_v3, %v33_v7  ;;  %v52_v15 = vsub.s32 %v2303_v3, %v34_v8 }
   0x7   :  { %v98_v16 = vsub.s32 %v32_v5, %v2303_v3  ;;  %vm2323_vm2 = vcmp.eq.s32.totalorder %v97_v9, 1  ;;  %v53_v18 = vsub.s32 %v2303_v3, %v35_v10  ;;  %v54_v19 = vsub.s32 %v2303_v3, %v36_v11 }
   0x8   :  { %vm66_vm3 = vcmp.eq.s32.totalorder %v50_v13, 1  ;;  %vm67_vm4 = vcmp.eq.s32.totalorder %v51_v14, 1  ;;  %vm68_vm5 = vcmp.eq.s32.totalorder %v52_v15, 1  ;;  %v99_v20 = vsub.s32 %v33_v7, %v2303_v3  ;;  %v2572_v15 = vld [vmem:[%s2876_s2] sm:$0xff] }
   0x9   :  { %vm2330_vm6 = vmpackc.low %vm66_vm3, %vm65_vm1  ;;  %vm114_vm7 = vcmp.eq.s32.totalorder %v98_v16, 1  ;;  %v100_v22 = vsub.s32 %v34_v8, %v2303_v3  ;;  %v38_v26 = vadd.s32 56, %v2301_v2  ;;  %v101_v27 = vsub.s32 %v35_v10, %v2303_v3  ;;  %v147_v16 = vld [vmem:[%s2877_s3] sm:$0xff] }
   0xa   :  { %1936 = vmatpush3.bf16.msk.msra.mxu0 %vm2330_vm6, %v2259_v23  ;;  %vm2338_vm8 = vmpackc.low %vm68_vm5, %vm67_vm4  ;;  %vm2342_vm9 = vcmp.eq.s32.totalorder %v99_v20, 1  ;;  %vm2355_vm11 = vcmp.eq.s32.totalorder %v53_v18, 1  ;;  %vm2359_vm12 = vcmp.eq.s32.totalorder %v54_v19, 1  ;;  %v102_v31 = vsub.s32 %v36_v11, %v2303_v3  ;;  %v26_v11 = vld [vmem:[%s2875_s1] sm:$0xff]  ;;  %v148_v18 = vld [vmem:[%s2877_s3 + $0x8] sm:$0xff] }
   0xb   :  { %1937 = vmatprep.subr.bf16.mxu0 %v2256_v1  ;;  %vm2351_vm10 = vmpackc.low %vm114_vm7, %vm2323_vm2  ;;  %vm116_vm13 = vcmp.eq.s32.totalorder %v100_v22, 1  ;;  %v55_v32 = vsub.s32 %v2303_v3, %v37_v12  ;;  %v56_v33 = vsub.s32 %v2303_v3, %v38_v26  ;;  %v39_v34 = vadd.s32 64, %v2301_v2 }
   0xc   :  { %1960 = vmatpush3.bf16.msk.msra.mxu1 %vm2351_vm10, %v2259_v23  ;;  %v40_v35 = vadd.s32 72, %v2301_v2  ;;  %vm2374_vm14 = vmpackc.low %vm116_vm13, %vm2342_vm9  ;;  %vm117_vm15 = vcmp.eq.s32.totalorder %v101_v27, 1  ;;  %vm118_vm1 = vcmp.eq.s32.totalorder %v102_v31, 1  ;;  %v103_v37 = vsub.s32 %v37_v12, %v2303_v3  ;;  %v2585_v27 = vld [vmem:[%s2876_s2 + $0x8] sm:$0xff] }
   0xd   :  { %1961 = vmatprep.subr.bf16.mxu1 %v2256_v1  ;;  %v104_v38 = vsub.s32 %v38_v26, %v2303_v3  ;;  %vm2388_vm2 = vmpackc.low %vm2359_vm12, %vm2355_vm11  ;;  %v41_v40 = vadd.s32 80, %v2301_v2  ;;  %v42_v41 = vadd.s32 88, %v2301_v2  ;;  %vm71_vm3 = vcmp.eq.s32.totalorder %v55_v32, 1 }
   0xe   :  { %1939 = vmatpush3.bf16.msk.msra.mxu0 %vm2338_vm8, %v2259_v23  ;;  %v2916_v39 = vsel %vm2388_vm2, 4294967295, %v2915_v39  ;;  %vm72_vm4 = vcmp.eq.s32.totalorder %v56_v33, 1  ;;  %v57_v42 = vsub.s32 %v2303_v3, %v39_v34  ;;  %v58_v43 = vsub.s32 %v2303_v3, %v40_v35  ;;  %vm2400_vm5 = vmpackc.low %vm118_vm1, %vm117_vm15 }
   0xf   :  { %1940 = vmatprep.subr.bf16.mxu0 %v2256_v1  ;;  %vm119_vm7 = vcmp.eq.s32.totalorder %v103_v37, 1  ;;  %vm120_vm9 = vcmp.eq.s32.totalorder %v104_v38, 1  ;;  %v105_v45 = vsub.s32 %v39_v34, %v2303_v3  ;;  %v106_v46 = vsub.s32 %v40_v35, %v2303_v3  ;;  %vm2410_vm11 = vmpackc.low %vm72_vm4, %vm71_vm3 }
  0x10   :  { %1963 = vmatpush3.bf16.msk.msra.mxu1 %vm2374_vm14, %v2259_v23  ;;  %v2920_v47 = vsel %vm2410_vm11, 4294967295, %v2919_v47  ;;  %v59_v48 = vsub.s32 %v2303_v3, %v41_v40  ;;  %v60_v49 = vsub.s32 %v2303_v3, %v42_v41  ;;  %vm73_vm12 = vcmp.eq.s32.totalorder %v57_v42, 1  ;;  %vm2422_vm15 = vmpackc.low %vm120_vm9, %vm119_vm7 }
  0x11   :  { %1964 = vmatprep.subr.bf16.mxu1 %v2256_v1  ;;  %vm74_vm13 = vcmp.eq.s32.totalorder %v58_v43, 1  ;;  %v43_v50 = vadd.s32 96, %v2301_v2  ;;  %v44_v51 = vadd.s32 104, %v2301_v2  ;;  %vm121_vm1 = vcmp.eq.s32.totalorder %v105_v45, 1 }
  0x12   :  { %1942 = vmatpush3.bf16.msk.msra.mxu0 %vm2388_vm2, %v2259_v23  ;;  %vm122_vm3 = vcmp.eq.s32.totalorder %v106_v46, 1  ;;  %v107_v53 = vsub.s32 %v41_v40, %v2303_v3  ;;  %v108_v54 = vsub.s32 %v42_v41, %v2303_v3  ;;  %vm2432_vm4 = vmpackc.low %vm74_vm13, %vm73_vm12  ;;  %vm2436_vm7 = vcmp.eq.s32.totalorder %v59_v48, 1 }
  0x13   :  { %1943 = vmatprep.subr.bf16.mxu0 %v2256_v1  ;;  %v2924_v55 = vsel %vm2432_vm4, 4294967295, %v2923_v55  ;;  %vm76_vm9 = vcmp.eq.s32.totalorder %v60_v49, 1  ;;  %v61_v57 = vsub.s32 %v2303_v3, %v43_v50  ;;  %v62_v58 = vsub.s32 %v2303_v3, %v44_v51  ;;  %vm2448_vm12 = vmpackc.low %vm122_vm3, %vm121_vm1 }
  0x14   :  { %1966 = vmatpush3.bf16.msk.msra.mxu1 %vm2400_vm5, %v2259_v23  ;;  %v45_v59 = vadd.s32 112, %v2301_v2  ;;  %v46_v60 = vadd.s32 120, %v2301_v2  ;;  %vm123_vm13 = vcmp.eq.s32.totalorder %v107_v53, 1  ;;  %vm124_vm0 = vcmp.eq.s32.totalorder %v108_v54, 1 }
  0x15   :  { %1967 = vmatprep.subr.bf16.mxu1 %v2256_v1  ;;  %v109_v62 = vsub.s32 %v43_v50, %v2303_v3  ;;  %v110_v63 = vsub.s32 %v44_v51, %v2303_v3  ;;  %v2929_v0 = vmov 0  ;;  %vm77_vm1 = vcmp.eq.s32.totalorder %v61_v57, 1 }
  0x16   :  { %1945 = vmatpush3.bf16.msk.msra.mxu0 %vm2410_vm11, %v2259_v23  ;;  %vm2460_vm11 = vmpackc.low %vm76_vm9, %vm2436_vm7  ;;  %vm78_vm3 = vcmp.eq.s32.totalorder %v62_v58, 1  ;;  %v63_v2 = vsub.s32 %v2303_v3, %v45_v59  ;;  %v64_v5 = vsub.s32 %v2303_v3, %v46_v60  ;;  %v2931_v6 = vmov 0 }
  0x17   :  { %1946 = vmatprep.subr.bf16.mxu0 %v2256_v1  ;;  %v2930_v0 = vsel %vm2460_vm11, 4294967295, %v2929_v0  ;;  %vm125_vm7 = vcmp.eq.s32.totalorder %v109_v62, 1  ;;  %vm126_vm9 = vcmp.eq.s32.totalorder %v110_v63, 1  ;;  %v111_v7 = vsub.s32 %v45_v59, %v2303_v3  ;;  %vm2480_vm2 = vmpackc.low %vm78_vm3, %vm77_vm1 }
  0x18   :  { %1969 = vmatpush3.bf16.msk.msra.mxu1 %vm2422_vm15, %v2259_v23  ;;  %v112_v8 = vsub.s32 %v46_v60, %v2303_v3  ;;  %v2935_v10 = vmov 0  ;;  %v24_v3 = vld [vmem:[%s2874_s0] sm:$0xff]  ;;  %v2939_v14 = vmov 0  ;;  %v2260_v17 = vmov 0  }
  0x19   :  { %1970 = vmatprep.subr.bf16.mxu1 %v2256_v1  ;;  %vm127_vm1 = vcmp.eq.s32.totalorder %v111_v7, 1  ;;  %v28_v13 = vmax.f32 %v24_v3, %v26_v11  ;;  %2198 = vset.pattern.permute.xlu0 %v2260_v17 }
  0x1a   :  { %1948 = vmatpush3.bf16.msk.msra.mxu0 %vm2432_vm4, %v2259_v23  ;;  %vm2470_vm4 = vmpackc.low %vm124_vm0, %vm123_vm13  ;;  %vm79_vm0 = vcmp.eq.s32.totalorder %v63_v2, 1  ;;  %vm80_vm13 = vcmp.eq.s32.totalorder %v64_v5, 1  ;;  %vm128_vm3 = vcmp.eq.s32.totalorder %v112_v8, 1  ;;  %2199 = vset.pattern.permute.xlu1 %v2260_v17 }
  0x1b   :  { %1949 = vmatprep.subr.bf16.mxu0 %v2256_v1  ;;  %v2932_v6 = vsel %vm2470_vm4, 4294967295, %v2931_v6  ;;  %295 = vperm.xlu0 %2198, %v147_v16  }
  0x1c   :  { %1972 = vmatpush3.bf16.msk.msra.mxu1 %vm2448_vm12, %v2259_v23 }
  0x1d   :  { %1973 = vmatprep.subr.bf16.mxu1 %v2256_v1 }
  0x1e   :  { %1951 = vmatpush3.bf16.msk.msra.mxu0 %vm2460_vm11, %v2259_v23  ;;  %vm2488_vm11 = vmpackc.low %vm126_vm9, %vm125_vm7 }
  0x1f   :  { %1952 = vmatprep.subr.bf16.mxu0 %v2256_v1  ;;  %v2936_v10 = vsel %vm2488_vm11, 4294967295, %v2935_v10  ;;  %vm2502_vm7 = vmpackc.low %vm80_vm13, %vm79_vm0  ;;  %vm2891_vm0 = vcmask 195584   ;;  %300 = vperm.xlu0 %2198, %v148_v18   ;;  %vm2941_vm13 = vnez %v2916_v39 }
  0x20   :  { %1975 = vmatpush3.bf16.msk.msra.mxu1 %vm2470_vm4, %v2259_v23  ;;  %vm2510_vm9 = vmpackc.low %vm128_vm3, %vm127_vm1  ;;  %vm2942_vm1 = vnez %v2920_v47  ;;  %vm2943_vm3 = vnez %v2924_v55 }
  0x21   :  { %1976 = vmatprep.subr.bf16.mxu1 %v2256_v1  ;;  %v2940_v14 = vsel %vm2510_vm9, 4294967295, %v2939_v14 }
  0x22   :  { %1954 = vmatpush3.bf16.msk.msra.mxu0 %vm2480_vm2, %v2259_v23 }
  0x23   :  { %1955 = vmatprep.subr.bf16.mxu0 %v2256_v1 }
  0x24   :  { %1978 = vmatpush3.bf16.msk.msra.mxu1 %vm2488_vm11, %v2259_v23 }
  0x25   :  { %1979 = vmatprep.subr.bf16.mxu1 %v2256_v1 }
  0x26   :  { %1957 = vmatpush3.bf16.msk.msra.mxu0 %vm2502_vm7, %v2259_v23 }
  0x27   :  { %2019 = vmatprep.subr.msk.bf16.mxu0 %vm2351_vm10, %v2259_v23 }
  0x28   :  { %1981 = vmatpush3.bf16.msk.msra.mxu1 %vm2510_vm9, %v2259_v23 }
  0x29   :  { %1639 = vmatmul.mubr.f32.vlgmr.msra.gmra.mrb[0].mxu0 %v28_v13 }
  0x2a   :  { %2021 = vmatpush3.bf16.msk.msra.mxu0 %vm2351_vm10, %v2259_v23 }
  0x2b   :  { %1674 = vmatmul.mubr.f32.vlgmr.msra.gmra.mrb[0].mxu1 %v28_v13  ;;  %2023 = vmatprep.subr.msk.bf16.mxu0 %vm2374_vm14, %v2259_v23 }
  0x2c   :  { %1682 = vmatprep.mubr.msk.f32.mxu1 %vm2891_vm0, %v2572_v15 }
  0x2e   :  { %2025 = vmatpush3.bf16.msk.msra.mxu0 %vm2374_vm14, %v2259_v23 }
  0x2f   :  { %2027 = vmatprep.subr.msk.bf16.mxu0 %vm2400_vm5, %v2259_v23 }
  0x32   :  { %2029 = vmatpush3.bf16.msk.msra.mxu0 %vm2400_vm5, %v2259_v23 }
  0x33   :  { %2031 = vmatprep.subr.msk.bf16.mxu0 %vm2422_vm15, %v2259_v23 }
  0x36   :  { %2033 = vmatpush3.bf16.msk.msra.mxu0 %vm2422_vm15, %v2259_v23 }
  0x37   :  { %2035 = vmatprep.subr.msk.bf16.mxu0 %vm2448_vm12, %v2259_v23 }
  0x3a   :  { %2037 = vmatpush3.bf16.msk.msra.mxu0 %vm2448_vm12, %v2259_v23 }
  0x3b   :  { %2039 = vmatprep.subr.msk.bf16.mxu0 %vm2470_vm4, %v2259_v23 }
  0x3e   :  { %2041 = vmatpush3.bf16.msk.msra.mxu0 %vm2470_vm4, %v2259_v23  ;;  %vm2945_vm4 = vmmov 0  }
  0x3f   :  { %2043 = vmatprep.subr.msk.bf16.mxu0 %vm2488_vm11, %v2259_v23 }
  0x42   :  { %2045 = vmatpush3.bf16.msk.msra.mxu0 %vm2488_vm11, %v2259_v23 }
  0x43   :  { %2047 = vmatprep.subr.msk.bf16.mxu0 %vm2510_vm9, %v2259_v23 }
  0x46   :  { %2049 = vmatpush3.bf16.msk.msra.mxu0 %vm2510_vm9, %v2259_v23 }
  0x47   :  { %2062 = vmatprep.subr.bf16.mxu0 %v2256_v1 }
  0x9a   :  { %v2637_v29 = vpop.permute.xlu0 %295 }
  0x9e   :  { %v2639_v30 = vpop.permute.xlu0 %300 }
  0xfc   :  { %v219_v19 = vpop.f32.mrb[0].mxu0 }
  0xfd   :  { %v1982_v20 = vpack.c.bf16 %v28_v13, %v219_v19  ;;  %v1640_v22 = vpop.f32.mrb[1].mxu0 }
  0xfe   :  { %v289_v25 = vpop.f32.mrb[0].mxu1 }
  0xff   :  { %1983 = vmatprep.subr.bf16.mxu1 %v1982_v20  ;;  %v1675_v26 = vpop.f32.mrb[1].mxu1 }
 0x100   :  { %1985 = vmatpush3.bf16.msra.mxu1 %v1982_v20 }
 0x101   :  { %1680 = vmatprep.subr.mxu1 %v289_v25 }
 0x104   :  { %1681 = vmatpush3.msra.mxu1 %v289_v25 }
 0x105   :  { %1683 = vmatmul.mubr.msk.f32.vlgmr.msra.gmra.mrb[2].mxu1 %vm2891_vm0, %v2585_v27  ;;  %1987 = vmatprep.subr.msk.bf16.mxu1 %vm2330_vm6, %v2259_v23  ;;  %vm2944_vm0 = vnez %v2930_v0 }
 0x106   :  { %1989 = vmatpush3.bf16.msk.msra.mxu1 %vm2330_vm6, %v2259_v23 }
 0x107   :  { %1991 = vmatprep.subr.msk.bf16.mxu1 %vm2338_vm8, %v2259_v23 }
 0x10a   :  { %1993 = vmatpush3.bf16.msk.msra.mxu1 %vm2338_vm8, %v2259_v23 }
 0x10b   :  { %1995 = vmatprep.subr.msk.bf16.mxu1 %vm2941_vm13, %v2259_v23 }
 0x10e   :  { %1997 = vmatpush3.bf16.msk.msra.mxu1 %vm2941_vm13, %v2259_v23 }
 0x10f   :  { %1999 = vmatprep.subr.msk.bf16.mxu1 %vm2942_vm1, %v2259_v23 }
 0x112   :  { %2001 = vmatpush3.bf16.msk.msra.mxu1 %vm2942_vm1, %v2259_v23 }
 0x113   :  { %2003 = vmatprep.subr.msk.bf16.mxu1 %vm2943_vm3, %v2259_v23 }
 0x116   :  { %2005 = vmatpush3.bf16.msk.msra.mxu1 %vm2943_vm3, %v2259_v23 }
 0x117   :  { %2007 = vmatprep.subr.msk.bf16.mxu1 %vm2944_vm0, %v2259_v23 }
 0x11a   :  { %2009 = vmatpush3.bf16.msk.msra.mxu1 %vm2944_vm0, %v2259_v23 }
 0x11b   :  { %2011 = vmatprep.subr.msk.bf16.mxu1 %vm2480_vm2, %v2259_v23 }
 0x11e   :  { %2013 = vmatpush3.bf16.msk.msra.mxu1 %vm2480_vm2, %v2259_v23 }
 0x11f   :  { %2015 = vmatprep.subr.msk.bf16.mxu1 %vm2502_vm7, %v2259_v23 }
 0x122   :  { %2017 = vmatpush3.bf16.msk.msra.mxu1 %vm2502_vm7, %v2259_v23 }
 0x1d8   :  { %v1684_v31 = vpop.f32.mrb[2].mxu1 }
 0x1d9   :  { %v382_v32 = vadd.f32 %v1684_v31, %v2639_v30  ;;  %v376_v33 = vpop.f32.mrb[3].mxu1 }
 0x1da   :  { %v377_v34 = vadd.f32 %v376_v33, %v2637_v29 }
 0x1db   :  { %v388_v35 = vmul.f32 0.70710677, %v382_v32 }
 0x1dc   :  { %v387_v37 = vmul.f32 0.70710677, %v377_v34 }
 0x1dd   :  { %v390_v38 = vand.u32 2147483647, %v388_v35  ;;  %vm430_vm9 = vcmp.ge.f32.partialorder %v388_v35, 0.0  ;;  %v27_v35 = vld [vmem:[%s2875_s1 + $0x8] sm:$0xff] }
 0x1de   :  { %v389_v40 = vand.u32 2147483647, %v387_v37  ;;  %vm429_vm11 = vcmp.ge.f32.partialorder %v387_v37, 0.0 }
 0x1df   :  { %v392_v41 = vmul.f32 0.3275911, %v390_v38  ;;  %v418_v46 = vsub.f32 0.0, %v390_v38 }
 0x1e0   :  { %v391_v42 = vmul.f32 0.3275911, %v389_v40  ;;  %v417_v48 = vsub.f32 0.0, %v389_v40 }
 0x1e1   :  { %v394_v43 = vadd.f32 1.0, %v392_v41  ;;  %v420_v50 = vmul.f32 %v418_v46, %v390_v38 }
 0x1e2   :  { %v393_v45 = vadd.f32 1.0, %v391_v42  ;;  %v419_v54 = vmul.f32 %v417_v48, %v389_v40  ;;  %v385_v48 = vmul.f32 0.5, %v377_v34  ;;  %v25_v34 = vld [vmem:[%s2874_s0 + $0x8] sm:$0xff] }
 0x1e3   :  { %2200 = vrcp.f32 %v394_v43  ;;  %v423_v58 = vmul.f32 1.442695, %v420_v50  ;;  %v386_v43 = vmul.f32 0.5, %v382_v32  ;;  %v2679_v32 = vld [vmem:[%s2878_s4] sm:$0xff]  ;;  %v29_v37 = vmax.f32 %v25_v34, %v27_v35 }
 0x1e4   :  { %2202 = vrcp.f32 %v393_v45  ;;  %v421_v62 = vmul.f32 1.442695, %v419_v54 }
 0x1e5   :  { %2204 = vpow2.f32 %v423_v58 }
 0x1e6   :  { %2206 = vpow2.f32 %v421_v62 }
 0x1ed   :  { %v2201_v49 = vpop.eup %2200 }
 0x1ee   :  { %v2203_v51 = vpop.eup %2202  ;;  %v400_v53 = vmul.f32 1.0614054, %v2201_v49 }
 0x1ef   :  { %v399_v56 = vmul.f32 1.0614054, %v2203_v51  ;;  %v2205_v20 = vpop.eup %2204 }
 0x1f0   :  { %v402_v57 = vadd.f32 -1.4531521, %v400_v53  ;;  %v2207_v25 = vpop.eup %2206 }
 0x1f1   :  { %v401_v59 = vadd.f32 -1.4531521, %v399_v56  ;;  %v152_v56 = vld [vmem:[%s2879_s5 + $0x8] sm:$0xff] }
 0x1f2   :  { %v404_v60 = vmul.f32 %v2201_v49, %v402_v57 }
 0x1f3   :  { %v403_v63 = vmul.f32 %v2203_v51, %v401_v59 }
 0x1f4   :  { %v406_v2 = vadd.f32 1.4214138, %v404_v60 }
 0x1f5   :  { %v405_v5 = vadd.f32 1.4214138, %v403_v63 }
 0x1f6   :  { %v408_v7 = vmul.f32 %v2201_v49, %v406_v2 }
 0x1f7   :  { %v407_v8 = vmul.f32 %v2203_v51, %v405_v5 }
 0x1f8   :  { %v410_v3 = vadd.f32 -0.28449672, %v408_v7 }
 0x1f9   :  { %v409_v11 = vadd.f32 -0.28449672, %v407_v8 }
 0x1fa   :  { %v412_v13 = vmul.f32 %v2201_v49, %v410_v3 }
 0x1fb   :  { %v411_v16 = vmul.f32 %v2203_v51, %v409_v11 }
 0x1fc   :  { %v414_v17 = vadd.f32 0.2548296, %v412_v13 }
 0x1fd   :  { %v413_v18 = vadd.f32 0.2548296, %v411_v16 }
 0x1fe   :  { %v416_v19 = vmul.f32 %v2201_v49, %v414_v17 }
 0x1ff   :  { %v415_v22 = vmul.f32 %v2203_v51, %v413_v18  ;;  %v151_v51 = vld [vmem:[%s2879_s5] sm:$0xff] }
 0x200   :  { %v426_v26 = vmul.f32 %v2205_v20, %v416_v19  ;;  %591 = vperm.xlu1 %2199, %v151_v51  }
 0x201   :  { %v425_v31 = vmul.f32 %v2207_v25, %v415_v22 }
 0x202   :  { %v428_v33 = vsub.f32 1.0, %v426_v26 }
 0x203   :  { %v427_v38 = vsub.f32 1.0, %v425_v31 }
 0x204   :  { %v432_v40 = vsub.f32 0.0, %v428_v33  ;;  %596 = vperm.xlu1 %2199, %v152_v56  }
 0x205   :  { %v431_v41 = vsub.f32 0.0, %v427_v38 }
 0x206   :  { %v434_v42 = vsel %vm430_vm9, %v428_v33, %v432_v40  ;;  %vm2946_vm9 = vcmask 195584  }
 0x207   :  { %v436_v45 = vadd.f32 1.0, %v434_v42  ;;  %v433_v46 = vsel %vm429_vm11, %v427_v38, %v431_v41  ;;  %vm2898_vm11 = vcmask 392192  }
 0x208   :  { %v435_v50 = vadd.f32 1.0, %v433_v46 }
 0x209   :  { %v438_v53 = vmul.f32 %v436_v45, %v386_v43 }
 0x20a   :  { %v437_v54 = vmul.f32 %v435_v50, %v385_v48 }
 0x20c   :  { %1717 = vmatprep.mubr.f32.mxu1 %v437_v54  ;;  %1752 = vmatprep.mubr.f32.mxu0 %v437_v54  ;;  %v2054_v49 = vpack.c.bf16 %v438_v53, %v437_v54 }
 0x20d   :  { %1718 = vmatmul.mubr.f32.vlgmr.msra.gmra.mrb[4].mxu1 %v438_v53  ;;  %1753 = vmatmul.mubr.f32.vlgmr.msra.gmra.mrb[2].mxu0 %v438_v53 }
 0x20e   :  { %2064 = vmatpush3.bf16.msk.msra.mxu0 %vm2330_vm6, %v2259_v23  ;;  %1802 = vmatprep.mubr.msk.f32.mxu0 %vm2945_vm4, %v2258_v4 }
 0x20f   :  { %2065 = vmatprep.subr.bf16.mxu0 %v2256_v1  ;;  %1767 = vmatprep.mubr.msk.f32.mxu1 %vm2898_vm11, %v2679_v32 }
 0x212   :  { %2067 = vmatpush3.bf16.msk.msra.mxu0 %vm2338_vm8, %v2259_v23 }
 0x213   :  { %2068 = vmatprep.subr.bf16.mxu0 %v2256_v1 }
 0x216   :  { %2070 = vmatpush3.bf16.msk.msra.mxu0 %vm2941_vm13, %v2259_v23 }
 0x217   :  { %2071 = vmatprep.subr.bf16.mxu0 %v2256_v1 }
 0x21a   :  { %2073 = vmatpush3.bf16.msk.msra.mxu0 %vm2942_vm1, %v2259_v23 }
 0x21b   :  { %2074 = vmatprep.subr.bf16.mxu0 %v2256_v1 }
 0x21e   :  { %2076 = vmatpush3.bf16.msk.msra.mxu0 %vm2943_vm3, %v2259_v23 }
 0x21f   :  { %2077 = vmatprep.subr.bf16.mxu0 %v2256_v1 }
 0x222   :  { %2079 = vmatpush3.bf16.msk.msra.mxu0 %vm2944_vm0, %v2259_v23 }
 0x223   :  { %2080 = vmatprep.subr.bf16.mxu0 %v2256_v1 }
 0x226   :  { %2082 = vmatpush3.bf16.msk.msra.mxu0 %vm2480_vm2, %v2259_v23 }
 0x227   :  { %2083 = vmatprep.subr.bf16.mxu0 %v2256_v1 }
 0x22a   :  { %2085 = vmatpush3.bf16.msk.msra.mxu0 %vm2502_vm7, %v2259_v23 }
 0x22d   :  { %1803 = vmatmul.mubr.f32.vlgmr.msra.gmra.mrb[4].mxu0 %v29_v37 }
 0x22e   :  { %1846 = vmatprep.mubr.msk.f32.mxu0 %vm2946_vm9, %v2572_v15  ;;  %v2700_v15 = vld [vmem:[%s2878_s4 + $0x8] sm:$0xff]  ;;  %vm2948_vm9 = vnez %v2936_v10  ;;  %s2261_s4 = smov [#allocation2]  }
 0x22f   :  { %s1293_s5 = sshll.u32 %s2261_s4, 4  ;;  %s1294_s5 = int_to_ptr.vmem [resolvable:$true] %s1293_s5 }
 0x230   :  { %s2232_s17 = scalar_lea.vmem %s1294_s5, 512  ;;  %p2237_p1 = scmp.lt.s32.totalorder %s1294_s5, %s1294_s5 }
 0x231   :  { %p2233_p0 = scmp.ne.s32.totalorder %s1294_s5, %s2232_s17  ;;  %p2238_p2 = scmp.lt.s32.totalorder %s2232_s17, %s2232_s17 }
 0x233   :  { %p2239_p3 = por %p2238_p2, %p2237_p1 }
 0x235   :  { %p2240_p4 = pnand %p2239_p3, %p2233_p0 }
 0x27f   :  { %v2786_v36 = vpop.permute.xlu1 %591 }
 0x283   :  { %v2788_v44 = vpop.permute.xlu1 %596 }
 0x2e0   :  { %v1719_v57 = vpop.f32.mrb[4].mxu1  ;;  %v1754_v58 = vpop.f32.mrb[2].mxu0 }
 0x2e1   :  { %v505_v59 = vpop.f32.mrb[5].mxu1  ;;  %v580_v60 = vpop.f32.mrb[3].mxu0 }
 0x2e2   :  { %v2050_v62 = vpack.c.bf16 %v1719_v57, %v505_v59  ;;  %v2058_v63 = vpack.c.bf16 %v1754_v58, %v580_v60 }
 0x2e4   :  { %2051 = vmatprep.subr.bf16.mxu1 %v2050_v62 }
 0x2e5   :  { %2053 = vmatpush3.bf16.msra.mxu1 %v2050_v62 }
 0x2e6   :  { %2055 = vmatprep.subr.bf16.mxu1 %v2054_v49 }
 0x2e9   :  { %2057 = vmatpush3.bf16.msra.mxu1 %v2054_v49 }
 0x2ea   :  { %2059 = vmatprep.subr.bf16.mxu1 %v2058_v63 }
 0x2ed   :  { %2061 = vmatpush3.bf16.msra.mxu1 %v2058_v63 }
 0x2ee   :  { %2086 = vmatprep.subr.bf16.mxu1 %v2256_v1 }
 0x2f0   :  { %1768 = vmatmul.mubr.msk.f32.vlgmr.msra.gmra.mrb[6].mxu1 %vm2898_vm11, %v2700_v15  ;;  %vm2949_vm11 = vnez %v2940_v14 }
 0x2f1   :  { %2088 = vmatpush3.bf16.msk.msra.mxu1 %vm2351_vm10, %v2259_v23  ;;  %1837 = vmatprep.mubr.msk.f32.mxu1 %vm2945_vm4, %v2258_v4  ;;  %vm2947_vm4 = vnez %v2932_v6 }
 0x2f2   :  { %2089 = vmatprep.subr.bf16.mxu1 %v2256_v1 }
 0x2f5   :  { %2091 = vmatpush3.bf16.msk.msra.mxu1 %vm2374_vm14, %v2259_v23 }
 0x2f6   :  { %2092 = vmatprep.subr.bf16.mxu1 %v2256_v1 }
 0x2f9   :  { %2094 = vmatpush3.bf16.msk.msra.mxu1 %vm2400_vm5, %v2259_v23 }
 0x2fa   :  { %2095 = vmatprep.subr.bf16.mxu1 %v2256_v1 }
 0x2fd   :  { %2097 = vmatpush3.bf16.msk.msra.mxu1 %vm2422_vm15, %v2259_v23 }
 0x2fe   :  { %2098 = vmatprep.subr.bf16.mxu1 %v2256_v1 }
 0x301   :  { %2100 = vmatpush3.bf16.msk.msra.mxu1 %vm2448_vm12, %v2259_v23 }
 0x302   :  { %2101 = vmatprep.subr.bf16.mxu1 %v2256_v1 }
 0x305   :  { %2103 = vmatpush3.bf16.msk.msra.mxu1 %vm2947_vm4, %v2259_v23 }
 0x306   :  { %2104 = vmatprep.subr.bf16.mxu1 %v2256_v1 }
 0x309   :  { %2106 = vmatpush3.bf16.msk.msra.mxu1 %vm2948_vm9, %v2259_v23 }
 0x30a   :  { %2107 = vmatprep.subr.bf16.mxu1 %v2256_v1  ;;  %v803_v1 = vpop.f32.mrb[4].mxu0 }
 0x30b   :  { %v2110_v4 = vpack.c.bf16 %v29_v37, %v803_v1  ;;  %v1804_v28 = vpop.f32.mrb[5].mxu0 }
 0x30d   :  { %2109 = vmatpush3.bf16.msk.msra.mxu1 %vm2949_vm11, %v2259_v23  ;;  %2111 = vmatprep.subr.bf16.mxu0 %v2110_v4 }
 0x30e   :  { %2147 = vmatprep.subr.msk.bf16.mxu1 %vm2351_vm10, %v2259_v23  ;;  %2113 = vmatpush3.bf16.msra.mxu0 %v2110_v4 }
 0x310   :  { %1838 = vmatmul.mubr.f32.vlgmr.msra.gmra.mrb[8].mxu1 %v29_v37 }
 0x311   :  { %2149 = vmatpush3.bf16.msk.msra.mxu1 %vm2351_vm10, %v2259_v23  ;;  %vm2950_vm10 = vcmask 195584  }
 0x312   :  { %2151 = vmatprep.subr.msk.bf16.mxu1 %vm2374_vm14, %v2259_v23 }
 0x315   :  { %2153 = vmatpush3.bf16.msk.msra.mxu1 %vm2374_vm14, %v2259_v23 }
 0x316   :  { %2155 = vmatprep.subr.msk.bf16.mxu1 %vm2400_vm5, %v2259_v23 }
 0x319   :  { %2157 = vmatpush3.bf16.msk.msra.mxu1 %vm2400_vm5, %v2259_v23  ;;  %vm2951_vm5 = vcmask 392192  }
 0x31a   :  { %2159 = vmatprep.subr.msk.bf16.mxu1 %vm2422_vm15, %v2259_v23 }
 0x31d   :  { %2161 = vmatpush3.bf16.msk.msra.mxu1 %vm2422_vm15, %v2259_v23  ;;  %vm2952_vm15 = vmmov %vm2951_vm5 }
 0x31e   :  { %2163 = vmatprep.subr.msk.bf16.mxu1 %vm2448_vm12, %v2259_v23 }
 0x321   :  { %2165 = vmatpush3.bf16.msk.msra.mxu1 %vm2448_vm12, %v2259_v23 }
 0x322   :  { %2167 = vmatprep.subr.msk.bf16.mxu1 %vm2947_vm4, %v2259_v23 }
 0x325   :  { %2169 = vmatpush3.bf16.msk.msra.mxu1 %vm2947_vm4, %v2259_v23 }
 0x326   :  { %2171 = vmatprep.subr.msk.bf16.mxu1 %vm2948_vm9, %v2259_v23 }
 0x329   :  { %2173 = vmatpush3.bf16.msk.msra.mxu1 %vm2948_vm9, %v2259_v23 }
 0x32a   :  { %2175 = vmatprep.subr.msk.bf16.mxu1 %vm2949_vm11, %v2259_v23 }
 0x32d   :  { %2177 = vmatpush3.bf16.msk.msra.mxu1 %vm2949_vm11, %v2259_v23 }
 0x3c3   :  { %v1769_v52 = vpop.f32.mrb[6].mxu1 }
 0x3c4   :  { %v2791_v61 = vadd.f32 %v1769_v52, %v2788_v44  ;;  %v672_v6 = vpop.f32.mrb[7].mxu1 }
 0x3c5   :  { %v2794_v10 = vadd.f32 %v672_v6, %v2786_v36 }
 0x3c6   :  { %v684_v14 = vmul.f32 0.70710677, %v2791_v61  ;;  %v682_v4 = vmul.f32 0.5, %v2791_v61 }
 0x3c7   :  { %v2798_v2 = vmul.f32 0.70710677, %v2794_v10  ;;  %v681_v6 = vmul.f32 0.5, %v2794_v10 }
 0x3c8   :  { %v686_v5 = vand.u32 2147483647, %v684_v14 }
 0x3c9   :  { %v685_v7 = vand.u32 2147483647, %v2798_v2 }
 0x3ca   :  { %v688_v8 = vmul.f32 0.3275911, %v686_v5  ;;  %v714_v16 = vsub.f32 0.0, %v686_v5 }
 0x3cb   :  { %v687_v3 = vmul.f32 0.3275911, %v685_v7  ;;  %v713_v17 = vsub.f32 0.0, %v685_v7 }
 0x3cc   :  { %v690_v11 = vadd.f32 1.0, %v688_v8  ;;  %v716_v19 = vmul.f32 %v714_v16, %v686_v5 }
 0x3cd   :  { %v689_v13 = vadd.f32 1.0, %v687_v3  ;;  %v715_v25 = vmul.f32 %v713_v17, %v685_v7 }
 0x3ce   :  { %2208 = vrcp.f32 %v690_v11  ;;  %v719_v33 = vmul.f32 1.442695, %v716_v19 }
 0x3cf   :  { %2210 = vrcp.f32 %v689_v13  ;;  %v717_v41 = vmul.f32 1.442695, %v715_v25 }
 0x3d0   :  { %2212 = vpow2.f32 %v719_v33 }
 0x3d1   :  { %2214 = vpow2.f32 %v717_v41 }
 0x3d8   :  { %v2209_v18 = vpop.eup %2208 }
 0x3d9   :  { %v2211_v20 = vpop.eup %2210  ;;  %v696_v22 = vmul.f32 1.0614054, %v2209_v18 }
 0x3da   :  { %v695_v26 = vmul.f32 1.0614054, %v2211_v20  ;;  %v2213_v57 = vpop.eup %2212 }
 0x3db   :  { %v698_v31 = vadd.f32 -1.4531521, %v696_v22  ;;  %v2215_v59 = vpop.eup %2214 }
 0x3dc   :  { %v697_v38 = vadd.f32 -1.4531521, %v695_v26 }
 0x3dd   :  { %v700_v40 = vmul.f32 %v2209_v18, %v698_v31 }
 0x3de   :  { %v699_v42 = vmul.f32 %v2211_v20, %v697_v38 }
 0x3df   :  { %v702_v43 = vadd.f32 1.4214138, %v700_v40 }
 0x3e0   :  { %v701_v45 = vadd.f32 1.4214138, %v699_v42 }
 0x3e1   :  { %v704_v46 = vmul.f32 %v2209_v18, %v702_v43 }
 0x3e2   :  { %v703_v48 = vmul.f32 %v2211_v20, %v701_v45 }
 0x3e3   :  { %v706_v50 = vadd.f32 -0.28449672, %v704_v46  ;;  %v873_v53 = vpop.f32.mrb[8].mxu1 }
 0x3e4   :  { %v705_v54 = vadd.f32 -0.28449672, %v703_v48  ;;  %v1839_v49 = vpop.f32.mrb[9].mxu1  ;;  %1844 = vmatprep.subr.mxu0 %v873_v53 }
 0x3e5   :  { %v708_v34 = vmul.f32 %v2209_v18, %v706_v50  ;;  %1845 = vmatpush3.msra.mxu0 %v873_v53 }
 0x3e6   :  { %v707_v35 = vmul.f32 %v2211_v20, %v705_v54  ;;  %1847 = vmatmul.mubr.msk.f32.vlgmr.msra.gmra.mrb[6].mxu0 %vm2950_vm10, %v2585_v27  ;;  %2115 = vmatprep.subr.msk.bf16.mxu0 %vm2330_vm6, %v2259_v23 }
 0x3e7   :  { %v710_v37 = vadd.f32 0.2548296, %v708_v34  ;;  %2117 = vmatpush3.bf16.msk.msra.mxu0 %vm2330_vm6, %v2259_v23  ;;  %vm726_vm6 = vcmp.ge.f32.partialorder %v684_v14, 0.0 }
 0x3e8   :  { %v709_v51 = vadd.f32 0.2548296, %v707_v35  ;;  %2119 = vmatprep.subr.msk.bf16.mxu0 %vm2338_vm8, %v2259_v23 }
 0x3e9   :  { %v712_v56 = vmul.f32 %v2209_v18, %v710_v37 }
 0x3ea   :  { %v711_v58 = vmul.f32 %v2211_v20, %v709_v51 }
 0x3eb   :  { %v722_v60 = vmul.f32 %v2213_v57, %v712_v56  ;;  %2121 = vmatpush3.bf16.msk.msra.mxu0 %vm2338_vm8, %v2259_v23  ;;  %vm725_vm8 = vcmp.ge.f32.partialorder %v2798_v2, 0.0 }
 0x3ec   :  { %v721_v27 = vmul.f32 %v2215_v59, %v711_v58  ;;  %2123 = vmatprep.subr.msk.bf16.mxu0 %vm2941_vm13, %v2259_v23 }
 0x3ed   :  { %v724_v21 = vsub.f32 1.0, %v722_v60 }
 0x3ee   :  { %v723_v62 = vsub.f32 1.0, %v721_v27 }
 0x3ef   :  { %v728_v63 = vsub.f32 0.0, %v724_v21  ;;  %2125 = vmatpush3.bf16.msk.msra.mxu0 %vm2941_vm13, %v2259_v23 }
 0x3f0   :  { %v727_v1 = vsub.f32 0.0, %v723_v62  ;;  %2127 = vmatprep.subr.msk.bf16.mxu0 %vm2942_vm1, %v2259_v23 }
 0x3f1   :  { %v730_v24 = vsel %vm726_vm6, %v724_v21, %v728_v63 }
 0x3f2   :  { %v732_v28 = vadd.f32 1.0, %v730_v24  ;;  %v729_v52 = vsel %vm725_vm8, %v723_v62, %v727_v1 }
 0x3f3   :  { %v731_v5 = vadd.f32 1.0, %v729_v52  ;;  %2129 = vmatpush3.bf16.msk.msra.mxu0 %vm2942_vm1, %v2259_v23 }
 0x3f4   :  { %v734_v39 = vmul.f32 %v732_v28, %v682_v4  ;;  %2131 = vmatprep.subr.msk.bf16.mxu0 %vm2943_vm3, %v2259_v23 }
 0x3f5   :  { %v733_v14 = vmul.f32 %v731_v5, %v681_v6 }
 0x3f6   :  { %736 = vst [vmem:[#allocation2 + $0x8] sm:$0xff] %v734_v39 }
 0x3f7   :  { %735 = vst [vmem:[#allocation2] sm:$0xff] %v733_v14  ;;  %2133 = vmatpush3.bf16.msk.msra.mxu0 %vm2943_vm3, %v2259_v23 }
 0x3f8   :  { %2135 = vmatprep.subr.msk.bf16.mxu0 %vm2944_vm0, %v2259_v23 }
 0x3fb   :  { %2137 = vmatpush3.bf16.msk.msra.mxu0 %vm2944_vm0, %v2259_v23 }
 0x3fc   :  { %2139 = vmatprep.subr.msk.bf16.mxu0 %vm2480_vm2, %v2259_v23 }
 0x3ff   :  { %2141 = vmatpush3.bf16.msk.msra.mxu0 %vm2480_vm2, %v2259_v23 }
 0x400   :  { %2143 = vmatprep.subr.msk.bf16.mxu0 %vm2502_vm7, %v2259_v23 }
 0x403   :  { %2145 = vmatpush3.bf16.msk.msra.mxu0 %vm2502_vm7, %v2259_v23 }
 0x4b9   :  { %v1848_v47 = vpop.f32.mrb[6].mxu0 }
 0x4ba   :  { %v949_v55 = vadd.f32 %v1848_v47, %v2639_v30  ;;  %v943_v0 = vpop.f32.mrb[7].mxu0 }
 0x4bb   :  { %v944_v61 = vadd.f32 %v943_v0, %v2637_v29 }
 0x4bc   :  { %v955_v10 = vmul.f32 0.70710677, %v949_v55  ;;  %v953_v27 = vmul.f32 0.5, %v949_v55 }
 0x4bd   :  { %v954_v2 = vmul.f32 0.70710677, %v944_v61  ;;  %v952_v63 = vmul.f32 0.5, %v944_v61 }
 0x4be   :  { %v957_v7 = vand.u32 2147483647, %v955_v10  ;;  %vm997_vm14 = vcmp.ge.f32.partialorder %v955_v10, 0.0 }
 0x4bf   :  { %v956_v8 = vand.u32 2147483647, %v954_v2  ;;  %vm996_vm2 = vcmp.ge.f32.partialorder %v954_v2, 0.0 }
 0x4c0   :  { %v959_v9 = vmul.f32 0.3275911, %v957_v7  ;;  %v985_v16 = vsub.f32 0.0, %v957_v7 }
 0x4c1   :  { %v958_v3 = vmul.f32 0.3275911, %v956_v8  ;;  %v984_v17 = vsub.f32 0.0, %v956_v8 }
 0x4c2   :  { %v961_v11 = vadd.f32 1.0, %v959_v9  ;;  %v987_v23 = vmul.f32 %v985_v16, %v957_v7 }
 0x4c3   :  { %v960_v13 = vadd.f32 1.0, %v958_v3  ;;  %v986_v30 = vmul.f32 %v984_v17, %v956_v8 }
 0x4c4   :  { %2216 = vrcp.f32 %v961_v11  ;;  %v990_v29 = vmul.f32 1.442695, %v987_v23 }
 0x4c5   :  { %2218 = vrcp.f32 %v960_v13  ;;  %v988_v31 = vmul.f32 1.442695, %v986_v30 }
 0x4c6   :  { %2220 = vpow2.f32 %v990_v29 }
 0x4c7   :  { %2222 = vpow2.f32 %v988_v31 }
 0x4ce   :  { %v2217_v12 = vpop.eup %2216 }
 0x4cf   :  { %v2219_v18 = vpop.eup %2218  ;;  %v967_v19 = vmul.f32 1.0614054, %v2217_v12 }
 0x4d0   :  { %v966_v20 = vmul.f32 1.0614054, %v2219_v18  ;;  %v2221_v49 = vpop.eup %2220 }
 0x4d1   :  { %v969_v22 = vadd.f32 -1.4531521, %v967_v19  ;;  %v2223_v35 = vpop.eup %2222 }
 0x4d2   :  { %v968_v25 = vadd.f32 -1.4531521, %v966_v20 }
 0x4d3   :  { %v971_v26 = vmul.f32 %v2217_v12, %v969_v22 }
 0x4d4   :  { %v970_v33 = vmul.f32 %v2219_v18, %v968_v25 }
 0x4d5   :  { %v973_v38 = vadd.f32 1.4214138, %v971_v26 }
 0x4d6   :  { %v972_v40 = vadd.f32 1.4214138, %v970_v33 }
 0x4d7   :  { %v975_v41 = vmul.f32 %v2217_v12, %v973_v38 }
 0x4d8   :  { %v974_v42 = vmul.f32 %v2219_v18, %v972_v40 }
 0x4d9   :  { %v977_v43 = vadd.f32 -0.28449672, %v975_v41 }
 0x4da   :  { %v976_v45 = vadd.f32 -0.28449672, %v974_v42 }
 0x4db   :  { %v979_v46 = vmul.f32 %v2217_v12, %v977_v43 }
 0x4dc   :  { %v978_v48 = vmul.f32 %v2219_v18, %v976_v45 }
 0x4dd   :  { %v981_v50 = vadd.f32 0.2548296, %v979_v46 }
 0x4de   :  { %v980_v53 = vadd.f32 0.2548296, %v978_v48 }
 0x4df   :  { %v983_v54 = vmul.f32 %v2217_v12, %v981_v50 }
 0x4e0   :  { %v982_v34 = vmul.f32 %v2219_v18, %v980_v53 }
 0x4e1   :  { %v993_v37 = vmul.f32 %v2221_v49, %v983_v54 }
 0x4e2   :  { %v992_v51 = vmul.f32 %v2223_v35, %v982_v34 }
 0x4e3   :  { %v995_v56 = vsub.f32 1.0, %v993_v37 }
 0x4e4   :  { %v994_v57 = vsub.f32 1.0, %v992_v51 }
 0x4e5   :  { %v999_v58 = vsub.f32 0.0, %v995_v56 }
 0x4e6   :  { %v998_v59 = vsub.f32 0.0, %v994_v57 }
 0x4e7   :  { %v1001_v60 = vsel %vm997_vm14, %v995_v56, %v999_v58 }
 0x4e8   :  { %v1003_v21 = vadd.f32 1.0, %v1001_v60  ;;  %v1000_v62 = vsel %vm996_vm2, %v994_v57, %v998_v59 }
 0x4e9   :  { %v1002_v1 = vadd.f32 1.0, %v1000_v62 }
 0x4ea   :  { %v1005_v24 = vmul.f32 %v1003_v21, %v953_v27 }
 0x4eb   :  { %v1004_v4 = vmul.f32 %v1002_v1, %v952_v63 }
 0x4ed   :  { %1881 = vmatprep.mubr.f32.mxu0 %v1004_v4  ;;  %1916 = vmatprep.mubr.f32.mxu1 %v1004_v4  ;;  %v2182_v28 = vpack.c.bf16 %v1005_v24, %v1004_v4 }
 0x4ee   :  { %1882 = vmatmul.mubr.f32.vlgmr.msra.gmra.mrb[8].mxu0 %v1005_v24  ;;  %1917 = vmatmul.mubr.f32.vlgmr.msra.gmra.mrb[10].mxu1 %v1005_v24 }
 0x4ef   :  { %1931 = vmatprep.mubr.msk.f32.mxu0 %vm2951_vm5, %v2679_v32 }
 0x5c1   :  { %v1883_v52 = vpop.f32.mrb[8].mxu0  ;;  %v1918_v6 = vpop.f32.mrb[10].mxu1 }
 0x5c2   :  { %v1072_v5 = vpop.f32.mrb[9].mxu0  ;;  %v1147_v39 = vpop.f32.mrb[11].mxu1 }
 0x5c3   :  { %v2178_v14 = vpack.c.bf16 %v1883_v52, %v1072_v5  ;;  %v2186_v47 = vpack.c.bf16 %v1918_v6, %v1147_v39 }
 0x5c5   :  { %2179 = vmatprep.subr.bf16.mxu0 %v2178_v14 }
 0x5c6   :  { %2181 = vmatpush3.bf16.msra.mxu0 %v2178_v14 }
 0x5c7   :  { %2183 = vmatprep.subr.bf16.mxu0 %v2182_v28 }
 0x5ca   :  { %2185 = vmatpush3.bf16.msra.mxu0 %v2182_v28 }
 0x5cb   :  { %2187 = vmatprep.subr.bf16.mxu0 %v2186_v47 }
 0x5ce   :  { %2189 = vmatpush3.bf16.msra.mxu0 %v2186_v47 }
 0x5d1   :  { %1932 = vmatmul.mubr.msk.f32.vlgmr.msra.gmra.mrb[10].mxu0 %vm2952_vm15, %v2700_v15 }
 0x6a4   :  { %v1933_v55 = vpop.f32.mrb[10].mxu0 }
 0x6a5   :  { %v1228_v0 = vadd.f32 %v1933_v55, %v2788_v44  ;;  %v1222_v61 = vpop.f32.mrb[11].mxu0 }
 0x6a6   :  { %v1223_v32 = vadd.f32 %v1222_v61, %v2786_v36 }
 0x6a7   :  { %v1234_v10 = vmul.f32 0.70710677, %v1228_v0  ;;  %v1232_v58 = vmul.f32 0.5, %v1228_v0 }
 0x6a8   :  { %v1233_v2 = vmul.f32 0.70710677, %v1223_v32  ;;  %v1231_v27 = vmul.f32 0.5, %v1223_v32 }
 0x6a9   :  { %v1236_v7 = vand.u32 2147483647, %v1234_v10  ;;  %vm1276_vm12 = vcmp.ge.f32.partialorder %v1234_v10, 0.0 }
 0x6aa   :  { %v1235_v8 = vand.u32 2147483647, %v1233_v2  ;;  %vm1275_vm7 = vcmp.ge.f32.partialorder %v1233_v2, 0.0 }
 0x6ab   :  { %v1238_v9 = vmul.f32 0.3275911, %v1236_v7  ;;  %v1264_v16 = vsub.f32 0.0, %v1236_v7 }
 0x6ac   :  { %v1237_v3 = vmul.f32 0.3275911, %v1235_v8  ;;  %v1263_v17 = vsub.f32 0.0, %v1235_v8 }
 0x6ad   :  { %v1240_v11 = vadd.f32 1.0, %v1238_v9  ;;  %v1266_v15 = vmul.f32 %v1264_v16, %v1236_v7 }
 0x6ae   :  { %v1239_v13 = vadd.f32 1.0, %v1237_v3  ;;  %v1265_v44 = vmul.f32 %v1263_v17, %v1235_v8 }
 0x6af   :  { %2224 = vrcp.f32 %v1240_v11  ;;  %v1269_v36 = vmul.f32 1.442695, %v1266_v15 }
 0x6b0   :  { %2226 = vrcp.f32 %v1239_v13  ;;  %v1267_v29 = vmul.f32 1.442695, %v1265_v44 }
 0x6b1   :  { %2228 = vpow2.f32 %v1269_v36 }
 0x6b2   :  { %2230 = vpow2.f32 %v1267_v29 }
 0x6b9   :  { %v2225_v12 = vpop.eup %2224 }
 0x6ba   :  { %v2227_v23 = vpop.eup %2226  ;;  %v1246_v18 = vmul.f32 1.0614054, %v2225_v12 }
 0x6bb   :  { %v1245_v19 = vmul.f32 1.0614054, %v2227_v23  ;;  %v2229_v50 = vpop.eup %2228 }
 0x6bc   :  { %v1248_v30 = vadd.f32 -1.4531521, %v1246_v18  ;;  %v2231_v54 = vpop.eup %2230 }
 0x6bd   :  { %v1247_v20 = vadd.f32 -1.4531521, %v1245_v19 }
 0x6be   :  { %v1250_v22 = vmul.f32 %v2225_v12, %v1248_v30 }
 0x6bf   :  { %v1249_v25 = vmul.f32 %v2227_v23, %v1247_v20 }
 0x6c0   :  { %v1252_v26 = vadd.f32 1.4214138, %v1250_v22 }
 0x6c1   :  { %v1251_v31 = vadd.f32 1.4214138, %v1249_v25 }
 0x6c2   :  { %v1254_v33 = vmul.f32 %v2225_v12, %v1252_v26 }
 0x6c3   :  { %v1253_v38 = vmul.f32 %v2227_v23, %v1251_v31 }
 0x6c4   :  { %v1256_v40 = vadd.f32 -0.28449672, %v1254_v33 }
 0x6c5   :  { %v1255_v41 = vadd.f32 -0.28449672, %v1253_v38 }
 0x6c6   :  { %v1258_v42 = vmul.f32 %v2225_v12, %v1256_v40 }
 0x6c7   :  { %v1257_v43 = vmul.f32 %v2227_v23, %v1255_v41 }
 0x6c8   :  { %v1260_v45 = vadd.f32 0.2548296, %v1258_v42 }
 0x6c9   :  { %v1259_v46 = vadd.f32 0.2548296, %v1257_v43 }
 0x6ca   :  { %v1262_v48 = vmul.f32 %v2225_v12, %v1260_v45 }
 0x6cb   :  { %v1261_v53 = vmul.f32 %v2227_v23, %v1259_v46 }
 0x6cc   :  { %v1272_v49 = vmul.f32 %v2229_v50, %v1262_v48 }
 0x6cd   :  { %v1271_v34 = vmul.f32 %v2231_v54, %v1261_v53 }
 0x6ce   :  { %v1274_v35 = vsub.f32 1.0, %v1272_v49 }
 0x6cf   :  { %v1273_v37 = vsub.f32 1.0, %v1271_v34 }
 0x6d0   :  { %v1278_v51 = vsub.f32 0.0, %v1274_v35 }
 0x6d1   :  { %v1277_v56 = vsub.f32 0.0, %v1273_v37 }
 0x6d2   :  { %v1280_v57 = vsel %vm1276_vm12, %v1274_v35, %v1278_v51 }
 0x6d3   :  { %v1282_v59 = vadd.f32 1.0, %v1280_v57  ;;  %v1279_v60 = vsel %vm1275_vm7, %v1273_v37, %v1277_v56 }
 0x6d4   :  { %v1281_v21 = vadd.f32 1.0, %v1279_v60 }
 0x6d5   :  { %v1284_v62 = vmul.f32 %v1282_v59, %v1232_v58 }
 0x6d6   :  { %v1283_v63 = vmul.f32 %v1281_v21, %v1231_v27 }
 0x6d7   :  { %1287 = vst [vmem:[#allocation2 + $0x18] sm:$0xff] %v1284_v62 }
 0x6d8   :  { %1286 = vst [vmem:[#allocation2 + $0x10] sm:$0xff] %v1283_v63 }
 0x6d9   :  { %2243 = shalt.err (!%p2240_p4)
}
 0x6da   :  { %s2244_s20 = scalar_lea.hbm %s2880_s6, 512 }
 0x6db   :  { %p2245_p5 = scmp.ne.s32.totalorder %s2880_s6, %s2244_s20  ;;  %p2248_p6 = scmp.lt.u32.totalorder %s2244_s20, %s2880_s6 }
 0x6dd   :  { %p2250_p7 = pnand %p2248_p6, %p2245_p5 }
 0x6df   :  { %2253 = shalt.err (!%p2250_p7)
}
 0x6e0   :  { %s2262_s25 = smov 128   ;;  %s2263_s26 = smov 8  }
 0x6e1   :  { %1299 = dma.vmem_to_hbm [thread:$0]  %s1294_s5, 512, %s2880_s6, [#allocation3], %s2262_s25, %s2262_s25, %s2263_s26  }
 0x6e2   :  { %2254 = dma.done.wait [#allocation3], 512  }
 0x6e3   :  { %2255 = vsyncadd [#allocation3], 4294966784 }
 0x6e4   :  { %1303 = vsyncpa [#allocation3], 1 }

</bundles_post_ra>
